<compile_context>
chip_gen: v5e
topology: v5e:2x2
jax: 0.10.0
libtpu: 0.0.40
codegen_flags: <defaults>
</compile_context>

<pallas_src>
import numpy as np
import jax
import jax.numpy as jnp
from jax import lax
from jax.experimental import pallas as pl
from jax.experimental.pallas import tpu as pltpu


def _leaky(z):
    # torch.nn.LeakyReLU() default negative_slope = 0.01
    return jnp.where(z > 0, z, 0.01 * z)


# ----------------------------- fused kernel -----------------------------

def _make_encoder_kernel(meta, lin_off, blin_off, *, K, L, Lout, Bt):
    """Build the fused kernel for one B_tile slab.

    meta: per-block static dicts with channel counts, dilation and the static
          row offsets of that block's weights inside the packed weight buffer.
    Refs: x (Bt, L, Cin0), packed weights (R, W), out (Bt, Lout, Cred).
    """

    def kernel(x_ref, w_ref, out_ref):
        h = x_ref[...].astype(jnp.float32)            # (Bt, L, Cin0), on-chip

        for blk in meta:
            cin, cout, dil = blk['cin'], blk['cout'], blk['dil']

            def conv(z, w_off, b_off, c_in, c_out, dil=dil):
                # im2col: K causally shifted copies of z, channels on the lane
                # axis, built in-register (static shifts, explicit zero pad).
                cols = []
                for j in range(K):
                    s = (K - 1 - j) * dil             # static shift, >= 0
                    if s == 0:
                        cols.append(z)
                    else:
                        zpad = jnp.zeros((Bt, s, c_in), jnp.float32)
                        cols.append(jnp.concatenate([zpad, z[:, :L - s, :]],
                                                    axis=1))
                im = jnp.concatenate(cols, axis=-1).reshape(Bt * L, K * c_in)
                w = w_ref[w_off:w_off + K * c_in, 0:c_out]     # (K*Cin, Cout)
                b = w_ref[b_off:b_off + 1, 0:c_out]            # (1, Cout)
                y = jnp.dot(im, w, preferred_element_type=jnp.float32) + b
                return y.reshape(Bt, L, c_out)

            # two causal convs; dropout(p=0) is a no-op
            h1 = _leaky(conv(h, blk['w1'], blk['b1'], cin, cout))
            h2 = _leaky(conv(h1, blk['w2'], blk['b2'], cout, cout))

            # residual branch: 1x1 conv iff Cin != Cout, else identity
            if blk['has_res']:
                wres = w_ref[blk['wres']:blk['wres'] + cin, 0:cout]
                bres = w_ref[blk['bres']:blk['bres'] + 1, 0:cout]
                res = (jnp.dot(h.reshape(Bt * L, cin), wres,
                               preferred_element_type=jnp.float32)
                       + bres).reshape(Bt, L, cout)
            else:
                res = h
            h = h2 + res        # final=False for every block -> no extra LeakyReLU

        # Final nn.Linear over the time axis: out[b] = wlin @ h[b] + blin.
        wlin = w_ref[lin_off:lin_off + Lout, 0:L]              # (Lout, L)
        blin = w_ref[blin_off:blin_off + Lout, 0:1]            # (Lout, 1)
        outs = [jnp.dot(wlin, h[b], preferred_element_type=jnp.float32) + blin
                for b in range(Bt)]
        out_ref[...] = jnp.stack(outs, axis=0).astype(out_ref.dtype)

    return kernel


def encoder_forward_pallas(x, packed_w, meta, lin_off, blin_off, *, K, Lout):
    """x: (B, L, Cin0) -> (B, Lout, Cred), single fused pallas_call."""
    B, L, Cin0 = x.shape
    Cred = meta[-1]['cout']

    # Batch tile: largest divisor of B with B_tile*L <= 256 (fills the MXU M-dim
    # on v6e/v7x; whole batch in one step for small B). VMEM is never a concern
    # at these widths (im2col slab <= 256 x 96 f32 ~ 100 KiB).
    Bt = 1
    for d in range(1, B + 1):
        if B % d == 0 and d * L <= 256:
            Bt = d
    grid = (B // Bt,)

    kernel = _make_encoder_kernel(meta, lin_off, blin_off,
                                  K=K, L=L, Lout=Lout, Bt=Bt)

    return pl.pallas_call(
        kernel,
        out_shape=jax.ShapeDtypeStruct((B, Lout, Cred), x.dtype),
        grid_spec=pltpu.PrefetchScalarGridSpec(
            num_scalar_prefetch=0,
            grid=grid,                         # one B_tile slab per step
            in_specs=[
                pl.BlockSpec((Bt, L, Cin0), lambda i: (i, 0, 0)),
                # single packed weight buffer, same block every step
                pl.BlockSpec(packed_w.shape, lambda i: (0, 0)),
            ],
            out_specs=pl.BlockSpec((Bt, Lout, Cred), lambda i: (i, 0, 0)),
        ),
        compiler_params=pltpu.CompilerParams(dimension_semantics=("parallel",)),
    )(x, packed_w)


# -------------------------- parameters (glue) --------------------------

def make_conv_params(key, cin, cout, k, scale=0.1):
    """weight_norm(Conv1d): w = g*v/||v|| with g initialised to ||v|| => w == v."""
    kv, kb = jax.random.split(key)
    v = jax.random.normal(kv, (cout, cin, k), jnp.float32) * scale
    norm = jnp.sqrt(jnp.sum(v * v, axis=(1, 2), keepdims=True))
    w = norm * v / norm
    b = jax.random.normal(kb, (cout,), jnp.float32) * scale
    return w, b


def build_params(key, in_channels, channels, reduced_size, n_layers, K,
                 input_len, output_len):
    blocks = []
    keys = jax.random.split(key, n_layers + 2)
    for i in range(n_layers + 1):             # n_layers blocks + final block
        if i < n_layers:
            cin = in_channels if i == 0 else channels
            cout = channels
        else:
            cin, cout = channels, reduced_size
        dilation = 2 ** i
        k1, k2, kr = jax.random.split(keys[i], 3)
        w1, b1 = make_conv_params(k1, cin, cout, K)
        w2, b2 = make_conv_params(k2, cout, cout, K)
        if cin != cout:                       # upordownsample 1x1 conv
            kr1, kr2 = jax.random.split(kr)
            wres = jax.random.normal(kr1, (cout, cin, 1), jnp.float32) * 0.1
            bres = jax.random.normal(kr2, (cout,), jnp.float32) * 0.1
        else:
            wres, bres = None, None
        blocks.append(dict(w1=w1, b1=b1, w2=w2, b2=b2, wres=wres, bres=bres,
                           dilation=dilation))
    klw, klb = jax.random.split(keys[-1])
    wlin = jax.random.normal(klw, (output_len, input_len), jnp.float32) * 0.1
    blin = jax.random.normal(klb, (output_len,), jnp.float32) * 0.1
    return blocks, wlin, blin


def prepare_kernel_inputs(blocks, wlin, blin, K):
    """One-time weight prep (hoisted out of the forward pass).

    * Conv weights (Cout, Cin, K) -> fused im2col layout (K*Cin, Cout) so each
      conv is ONE matmul inside the kernel.
    * Everything (conv weights, biases, residual 1x1, final Linear) is packed
      into a single flat f32 buffer; every piece starts at an 8-aligned row so
      in-kernel slices are sublane-aligned. Returns static per-block metadata
      with the row offsets.
    """
    pieces = []          # (row_offset, np 2-D array)
    cursor = 0

    def add(a):
        nonlocal cursor
        a = np.asarray(a, np.float32)
        off = cursor
        pieces.append((off, a))
        cursor = ((cursor + a.shape[0] + 7) // 8) * 8     # 8-row-aligned slots
        return off

    meta = []
    for blk in blocks:
        cout, cin, _ = blk['w1'].shape
        dil = int(blk['dilation'])
        has_res = blk['wres'] is not None
        w1 = np.transpose(np.asarray(blk['w1']), (2, 1, 0)).reshape(K * cin, cout)
        w2 = np.transpose(np.asarray(blk['w2']), (2, 1, 0)).reshape(K * cout, cout)
        entry = dict(cin=int(cin), cout=int(cout), dil=dil, has_res=has_res,
                     w1=add(w1), b1=add(np.asarray(blk['b1'])[None, :]),
                     w2=add(w2), b2=add(np.asarray(blk['b2'])[None, :]))
        if has_res:
            wres = np.transpose(np.asarray(blk['wres'])[:, :, 0], (1, 0))
            entry['wres'] = add(wres)
            entry['bres'] = add(np.asarray(blk['bres'])[None, :])
        meta.append(entry)

    lin_off = add(np.asarray(wlin))                        # (Lout, Lin)
    blin_off = add(np.asarray(blin)[:, None])              # (Lout, 1)

    maxw = max(a.shape[1] for _, a in pieces)
    packed = np.zeros((max(cursor, 8), maxw), np.float32)
    for off, a in pieces:
        packed[off:off + a.shape[0], 0:a.shape[1]] = a
    return jnp.asarray(packed), tuple(meta), lin_off, blin_off


# ----------------------------- reference -----------------------------

def encoder_forward_ref(x, blocks, wlin, blin, K):
    """Pure-JAX reference mirroring the PyTorch forward exactly (f32, HIGHEST)."""
    dn = ('NCH', 'OIH', 'NCH')
    hp = lax.Precision.HIGHEST
    h = jnp.transpose(x, (0, 2, 1))              # x.transpose(1, 2) -> (B, C, L)
    for blk in blocks:
        d = blk['dilation']
        pad = (K - 1) * d

        def conv(z, w, b, d=d, pad=pad):
            y = lax.conv_general_dilated(z, w, window_strides=(1,),
                                         padding=[(pad, 0)], rhs_dilation=(d,),
                                         dimension_numbers=dn, precision=hp)
            return y + b[None, :, None]

        h1 = _leaky(conv(h, blk['w1'], blk['b1']))
        h2 = _leaky(conv(h1, blk['w2'], blk['b2']))
        if blk['wres'] is None:
            res = h
        else:
            res = lax.conv_general_dilated(h, blk['wres'], (1,), [(0, 0)],
                                           dimension_numbers=dn, precision=hp) \
                  + blk['bres'][None, :, None]
        h = h2 + res
    z = jnp.einsum('ol,bcl->bco', wlin, h, precision=hp) + blin[None, None, :]
    return jnp.transpose(z, (0, 2, 1))           # final .transpose(1, 2)


# --------------------------------- main ---------------------------------

if __name__ == "__main__":
    # CausalCNNEncoder(in_channels=4, channels=32, reduced_size=8,
    #                  input_len=16, output_len=8, n_layers, kernel_size=3)
    configs = [
        dict(B=2, L_in=16, C_in=4, channels=32, reduced_size=8,
             n_layers=1, K=3, output_len=8),
        # deeper variant: exercises the identity-residual (Cin == Cout) path
        dict(B=2, L_in=16, C_in=4, channels=32, reduced_size=8,
             n_layers=2, K=3, output_len=8),
        # larger batch: exercises B_tile < B (multi-step grid, weights reused)
        dict(B=20, L_in=16, C_in=4, channels=32, reduced_size=8,
             n_layers=2, K=3, output_len=8),
    ]

    key = jax.random.PRNGKey(0)
    for cfg in configs:
        key, kparam, kx = jax.random.split(key, 3)
        blocks, wlin, blin = build_params(
            kparam, cfg['C_in'], cfg['channels'], cfg['reduced_size'],
            cfg['n_layers'], cfg['K'], cfg['L_in'], cfg['output_len'])
        x = jax.random.normal(kx, (cfg['B'], cfg['L_in'], cfg['C_in']),
                              jnp.float32)

        # weight layout / packing prep runs once, outside the forward pass
        packed_w, meta, lin_off, blin_off = prepare_kernel_inputs(
            blocks, wlin, blin, cfg['K'])

        out = encoder_forward_pallas(x, packed_w, meta, lin_off, blin_off,
                                     K=cfg['K'], Lout=cfg['output_len'])
        out = jax.block_until_ready(out)

        ref = encoder_forward_ref(x, blocks, wlin, blin, cfg['K'])
        assert out.shape == (cfg['B'], cfg['output_len'], cfg['reduced_size'])
        np.testing.assert_allclose(np.asarray(out), np.asarray(ref),
                                   rtol=1e-4, atol=1e-4)

    print("KERNEL_OK")
</pallas_src>

<mosaic_0001>
module attributes {stable_mosaic.version = 11 : i64} {
  func.func @kernel(%arg0: i32, %arg1: memref<2x16x4xf32, #tpu.memory_space<vmem>>, %arg2: memref<336x32xf32, #tpu.memory_space<vmem>>, %arg3: memref<2x8x8xf32, #tpu.memory_space<vmem>>) attributes {dimension_semantics = [#tpu.dimension_semantics<parallel>], iteration_bounds = array<i64: 1>, scalar_prefetch = 0 : i64, scratch_operands = 0 : i64, tpu.core_type = #tpu.core_type<tc>, window_params = [{transform_indices = @transform_0, window_bounds = array<i64: 2, 16, 4>}, {pipeline_mode = #tpu.pipeline_mode<synchronous>, transform_indices = @transform_1, window_bounds = array<i64: 336, 32>}, {transform_indices = @transform_2, window_bounds = array<i64: 2, 8, 8>}]} {
    %c0 = arith.constant 0 : index
    %c0_0 = arith.constant 0 : index
    %c0_1 = arith.constant 0 : index
    %0 = vector.load %arg1[%c0, %c0_0, %c0_1] : memref<2x16x4xf32, #tpu.memory_space<vmem>>, vector<2x16x4xf32>
    %cst = arith.constant 0.000000e+00 : f32
    %1 = vector.broadcast %cst : f32 to vector<2x2x4xf32>
    %2 = vector.extract_strided_slice %0 {offsets = [0, 0, 0], sizes = [2, 14, 4], strides = [1, 1, 1]} : vector<2x16x4xf32> to vector<2x14x4xf32>
    %3 = tpu.concatenate %1, %2 in 1 : vector<2x2x4xf32>, vector<2x14x4xf32> -> vector<2x16x4xf32>
    %cst_2 = arith.constant 0.000000e+00 : f32
    %4 = vector.broadcast %cst_2 : f32 to vector<2x1x4xf32>
    %5 = vector.extract_strided_slice %0 {offsets = [0, 0, 0], sizes = [2, 15, 4], strides = [1, 1, 1]} : vector<2x16x4xf32> to vector<2x15x4xf32>
    %6 = tpu.concatenate %4, %5 in 1 : vector<2x1x4xf32>, vector<2x15x4xf32> -> vector<2x16x4xf32>
    %7 = tpu.concatenate %3, %6, %0 in 2 : vector<2x16x4xf32>, vector<2x16x4xf32>, vector<2x16x4xf32> -> vector<2x16x12xf32>
    %8 = vector.shape_cast %7 : vector<2x16x12xf32> to vector<32x12xf32>
    %c0_3 = arith.constant 0 : index
    %c0_4 = arith.constant 0 : index
    %9 = vector.load %arg2[%c0_3, %c0_4] : memref<336x32xf32, #tpu.memory_space<vmem>>, vector<12x32xf32>
    %c16 = arith.constant 16 : index
    %c0_5 = arith.constant 0 : index
    %10 = vector.load %arg2[%c16, %c0_5] : memref<336x32xf32, #tpu.memory_space<vmem>>, vector<1x32xf32>
    %cst_6 = arith.constant dense<0.000000e+00> : vector<32x32xf32>
    %11 = tpu.matmul %8, %9, %cst_6 {dimension_numbers = #tpu.dot_dimension_numbers<[1], [0], [0], [1], [0, 0, 1, 1], [], []>} : vector<32x12xf32>, vector<12x32xf32>, vector<32x32xf32> -> vector<32x32xf32>
    %12 = vector.broadcast %10 : vector<1x32xf32> to vector<32x32xf32>
    %13 = arith.addf %11, %12 : vector<32x32xf32>
    %14 = vector.shape_cast %13 : vector<32x32xf32> to vector<2x16x32xf32>
    %cst_7 = arith.constant 0.000000e+00 : f32
    %15 = vector.broadcast %cst_7 : f32 to vector<2x16x32xf32>
    %16 = arith.cmpf ogt, %14, %15 : vector<2x16x32xf32>
    %cst_8 = arith.constant 0.00999999977 : f32
    %17 = vector.broadcast %cst_8 : f32 to vector<2x16x32xf32>
    %18 = arith.mulf %17, %14 : vector<2x16x32xf32>
    %19 = arith.select %16, %14, %18 : vector<2x16x32xi1>, vector<2x16x32xf32>
    %cst_9 = arith.constant 0.000000e+00 : f32
    %20 = vector.broadcast %cst_9 : f32 to vector<2x2x32xf32>
    %21 = vector.extract_strided_slice %19 {offsets = [0, 0, 0], sizes = [2, 14, 32], strides = [1, 1, 1]} : vector<2x16x32xf32> to vector<2x14x32xf32>
    %22 = tpu.concatenate %20, %21 in 1 : vector<2x2x32xf32>, vector<2x14x32xf32> -> vector<2x16x32xf32>
    %cst_10 = arith.constant 0.000000e+00 : f32
    %23 = vector.broadcast %cst_10 : f32 to vector<2x1x32xf32>
    %24 = vector.extract_strided_slice %19 {offsets = [0, 0, 0], sizes = [2, 15, 32], strides = [1, 1, 1]} : vector<2x16x32xf32> to vector<2x15x32xf32>
    %25 = tpu.concatenate %23, %24 in 1 : vector<2x1x32xf32>, vector<2x15x32xf32> -> vector<2x16x32xf32>
    %26 = tpu.concatenate %22, %25, %19 in 2 : vector<2x16x32xf32>, vector<2x16x32xf32>, vector<2x16x32xf32> -> vector<2x16x96xf32>
    %27 = vector.shape_cast %26 : vector<2x16x96xf32> to vector<32x96xf32>
    %c24 = arith.constant 24 : index
    %c0_11 = arith.constant 0 : index
    %28 = vector.load %arg2[%c24, %c0_11] : memref<336x32xf32, #tpu.memory_space<vmem>>, vector<96x32xf32>
    %c120 = arith.constant 120 : index
    %c0_12 = arith.constant 0 : index
    %29 = vector.load %arg2[%c120, %c0_12] : memref<336x32xf32, #tpu.memory_space<vmem>>, vector<1x32xf32>
    %cst_13 = arith.constant dense<0.000000e+00> : vector<32x32xf32>
    %30 = tpu.matmul %27, %28, %cst_13 {dimension_numbers = #tpu.dot_dimension_numbers<[1], [0], [0], [1], [0, 0, 1, 1], [], []>} : vector<32x96xf32>, vector<96x32xf32>, vector<32x32xf32> -> vector<32x32xf32>
    %31 = vector.broadcast %29 : vector<1x32xf32> to vector<32x32xf32>
    %32 = arith.addf %30, %31 : vector<32x32xf32>
    %33 = vector.shape_cast %32 : vector<32x32xf32> to vector<2x16x32xf32>
    %cst_14 = arith.constant 0.000000e+00 : f32
    %34 = vector.broadcast %cst_14 : f32 to vector<2x16x32xf32>
    %35 = arith.cmpf ogt, %33, %34 : vector<2x16x32xf32>
    %cst_15 = arith.constant 0.00999999977 : f32
    %36 = vector.broadcast %cst_15 : f32 to vector<2x16x32xf32>
    %37 = arith.mulf %36, %33 : vector<2x16x32xf32>
    %38 = arith.select %35, %33, %37 : vector<2x16x32xi1>, vector<2x16x32xf32>
    %c128 = arith.constant 128 : index
    %c0_16 = arith.constant 0 : index
    %39 = vector.load %arg2[%c128, %c0_16] : memref<336x32xf32, #tpu.memory_space<vmem>>, vector<4x32xf32>
    %c136 = arith.constant 136 : index
    %c0_17 = arith.constant 0 : index
    %40 = vector.load %arg2[%c136, %c0_17] : memref<336x32xf32, #tpu.memory_space<vmem>>, vector<1x32xf32>
    %41 = vector.shape_cast %0 : vector<2x16x4xf32> to vector<32x4xf32>
    %cst_18 = arith.constant dense<0.000000e+00> : vector<32x32xf32>
    %42 = tpu.matmul %41, %39, %cst_18 {dimension_numbers = #tpu.dot_dimension_numbers<[1], [0], [0], [1], [0, 0, 1, 1], [], []>} : vector<32x4xf32>, vector<4x32xf32>, vector<32x32xf32> -> vector<32x32xf32>
    %43 = vector.broadcast %40 : vector<1x32xf32> to vector<32x32xf32>
    %44 = arith.addf %42, %43 : vector<32x32xf32>
    %45 = vector.shape_cast %44 : vector<32x32xf32> to vector<2x16x32xf32>
    %46 = arith.addf %38, %45 : vector<2x16x32xf32>
    %cst_19 = arith.constant 0.000000e+00 : f32
    %47 = vector.broadcast %cst_19 : f32 to vector<2x4x32xf32>
    %48 = vector.extract_strided_slice %46 {offsets = [0, 0, 0], sizes = [2, 12, 32], strides = [1, 1, 1]} : vector<2x16x32xf32> to vector<2x12x32xf32>
    %49 = tpu.concatenate %47, %48 in 1 : vector<2x4x32xf32>, vector<2x12x32xf32> -> vector<2x16x32xf32>
    %cst_20 = arith.constant 0.000000e+00 : f32
    %50 = vector.broadcast %cst_20 : f32 to vector<2x2x32xf32>
    %51 = vector.extract_strided_slice %46 {offsets = [0, 0, 0], sizes = [2, 14, 32], strides = [1, 1, 1]} : vector<2x16x32xf32> to vector<2x14x32xf32>
    %52 = tpu.concatenate %50, %51 in 1 : vector<2x2x32xf32>, vector<2x14x32xf32> -> vector<2x16x32xf32>
    %53 = tpu.concatenate %49, %52, %46 in 2 : vector<2x16x32xf32>, vector<2x16x32xf32>, vector<2x16x32xf32> -> vector<2x16x96xf32>
    %54 = vector.shape_cast %53 : vector<2x16x96xf32> to vector<32x96xf32>
    %c144 = arith.constant 144 : index
    %c0_21 = arith.constant 0 : index
    %55 = vector.load %arg2[%c144, %c0_21] : memref<336x32xf32, #tpu.memory_space<vmem>>, vector<96x8xf32>
    %c240 = arith.constant 240 : index
    %c0_22 = arith.constant 0 : index
    %56 = vector.load %arg2[%c240, %c0_22] : memref<336x32xf32, #tpu.memory_space<vmem>>, vector<1x8xf32>
    %cst_23 = arith.constant dense<0.000000e+00> : vector<32x8xf32>
    %57 = tpu.matmul %54, %55, %cst_23 {dimension_numbers = #tpu.dot_dimension_numbers<[1], [0], [0], [1], [0, 0, 1, 1], [], []>} : vector<32x96xf32>, vector<96x8xf32>, vector<32x8xf32> -> vector<32x8xf32>
    %58 = vector.broadcast %56 : vector<1x8xf32> to vector<32x8xf32>
    %59 = arith.addf %57, %58 : vector<32x8xf32>
    %60 = vector.shape_cast %59 : vector<32x8xf32> to vector<2x16x8xf32>
    %cst_24 = arith.constant 0.000000e+00 : f32
    %61 = vector.broadcast %cst_24 : f32 to vector<2x16x8xf32>
    %62 = arith.cmpf ogt, %60, %61 : vector<2x16x8xf32>
    %cst_25 = arith.constant 0.00999999977 : f32
    %63 = vector.broadcast %cst_25 : f32 to vector<2x16x8xf32>
    %64 = arith.mulf %63, %60 : vector<2x16x8xf32>
    %65 = arith.select %62, %60, %64 : vector<2x16x8xi1>, vector<2x16x8xf32>
    %cst_26 = arith.constant 0.000000e+00 : f32
    %66 = vector.broadcast %cst_26 : f32 to vector<2x4x8xf32>
    %67 = vector.extract_strided_slice %65 {offsets = [0, 0, 0], sizes = [2, 12, 8], strides = [1, 1, 1]} : vector<2x16x8xf32> to vector<2x12x8xf32>
    %68 = tpu.concatenate %66, %67 in 1 : vector<2x4x8xf32>, vector<2x12x8xf32> -> vector<2x16x8xf32>
    %cst_27 = arith.constant 0.000000e+00 : f32
    %69 = vector.broadcast %cst_27 : f32 to vector<2x2x8xf32>
    %70 = vector.extract_strided_slice %65 {offsets = [0, 0, 0], sizes = [2, 14, 8], strides = [1, 1, 1]} : vector<2x16x8xf32> to vector<2x14x8xf32>
    %71 = tpu.concatenate %69, %70 in 1 : vector<2x2x8xf32>, vector<2x14x8xf32> -> vector<2x16x8xf32>
    %72 = tpu.concatenate %68, %71, %65 in 2 : vector<2x16x8xf32>, vector<2x16x8xf32>, vector<2x16x8xf32> -> vector<2x16x24xf32>
    %73 = vector.shape_cast %72 : vector<2x16x24xf32> to vector<32x24xf32>
    %c248 = arith.constant 248 : index
    %c0_28 = arith.constant 0 : index
    %74 = vector.load %arg2[%c248, %c0_28] : memref<336x32xf32, #tpu.memory_space<vmem>>, vector<24x8xf32>
    %c272 = arith.constant 272 : index
    %c0_29 = arith.constant 0 : index
    %75 = vector.load %arg2[%c272, %c0_29] : memref<336x32xf32, #tpu.memory_space<vmem>>, vector<1x8xf32>
    %cst_30 = arith.constant dense<0.000000e+00> : vector<32x8xf32>
    %76 = tpu.matmul %73, %74, %cst_30 {dimension_numbers = #tpu.dot_dimension_numbers<[1], [0], [0], [1], [0, 0, 1, 1], [], []>} : vector<32x24xf32>, vector<24x8xf32>, vector<32x8xf32> -> vector<32x8xf32>
    %77 = vector.broadcast %75 : vector<1x8xf32> to vector<32x8xf32>
    %78 = arith.addf %76, %77 : vector<32x8xf32>
    %79 = vector.shape_cast %78 : vector<32x8xf32> to vector<2x16x8xf32>
    %cst_31 = arith.constant 0.000000e+00 : f32
    %80 = vector.broadcast %cst_31 : f32 to vector<2x16x8xf32>
    %81 = arith.cmpf ogt, %79, %80 : vector<2x16x8xf32>
    %cst_32 = arith.constant 0.00999999977 : f32
    %82 = vector.broadcast %cst_32 : f32 to vector<2x16x8xf32>
    %83 = arith.mulf %82, %79 : vector<2x16x8xf32>
    %84 = arith.select %81, %79, %83 : vector<2x16x8xi1>, vector<2x16x8xf32>
    %c280 = arith.constant 280 : index
    %c0_33 = arith.constant 0 : index
    %85 = vector.load %arg2[%c280, %c0_33] : memref<336x32xf32, #tpu.memory_space<vmem>>, vector<32x8xf32>
    %c312 = arith.constant 312 : index
    %c0_34 = arith.constant 0 : index
    %86 = vector.load %arg2[%c312, %c0_34] : memref<336x32xf32, #tpu.memory_space<vmem>>, vector<1x8xf32>
    %87 = vector.shape_cast %46 : vector<2x16x32xf32> to vector<32x32xf32>
    %cst_35 = arith.constant dense<0.000000e+00> : vector<32x8xf32>
    %88 = tpu.matmul %87, %85, %cst_35 {dimension_numbers = #tpu.dot_dimension_numbers<[1], [0], [0], [1], [0, 0, 1, 1], [], []>} : vector<32x32xf32>, vector<32x8xf32>, vector<32x8xf32> -> vector<32x8xf32>
    %89 = vector.broadcast %86 : vector<1x8xf32> to vector<32x8xf32>
    %90 = arith.addf %88, %89 : vector<32x8xf32>
    %91 = vector.shape_cast %90 : vector<32x8xf32> to vector<2x16x8xf32>
    %92 = arith.addf %84, %91 : vector<2x16x8xf32>
    %c320 = arith.constant 320 : index
    %c0_36 = arith.constant 0 : index
    %93 = vector.load %arg2[%c320, %c0_36] : memref<336x32xf32, #tpu.memory_space<vmem>>, vector<8x16xf32>
    %c328 = arith.constant 328 : index
    %c0_37 = arith.constant 0 : index
    %94 = vector.load %arg2[%c328, %c0_37] : memref<336x32xf32, #tpu.memory_space<vmem>>, vector<8x1xf32>
    %95 = vector.extract_strided_slice %92 {offsets = [0, 0, 0], sizes = [1, 16, 8], strides = [1, 1, 1]} : vector<2x16x8xf32> to vector<1x16x8xf32>
    %96 = vector.shape_cast %95 : vector<1x16x8xf32> to vector<16x8xf32>
    %cst_38 = arith.constant dense<0.000000e+00> : vector<8x8xf32>
    %97 = tpu.matmul %93, %96, %cst_38 {dimension_numbers = #tpu.dot_dimension_numbers<[1], [0], [0], [1], [0, 0, 1, 1], [], []>} : vector<8x16xf32>, vector<16x8xf32>, vector<8x8xf32> -> vector<8x8xf32>
    %98 = vector.broadcast %94 : vector<8x1xf32> to vector<8x8xf32>
    %99 = arith.addf %97, %98 : vector<8x8xf32>
    %100 = vector.extract_strided_slice %92 {offsets = [1, 0, 0], sizes = [1, 16, 8], strides = [1, 1, 1]} : vector<2x16x8xf32> to vector<1x16x8xf32>
    %101 = vector.shape_cast %100 : vector<1x16x8xf32> to vector<16x8xf32>
    %cst_39 = arith.constant dense<0.000000e+00> : vector<8x8xf32>
    %102 = tpu.matmul %93, %101, %cst_39 {dimension_numbers = #tpu.dot_dimension_numbers<[1], [0], [0], [1], [0, 0, 1, 1], [], []>} : vector<8x16xf32>, vector<16x8xf32>, vector<8x8xf32> -> vector<8x8xf32>
    %103 = vector.broadcast %94 : vector<8x1xf32> to vector<8x8xf32>
    %104 = arith.addf %102, %103 : vector<8x8xf32>
    %105 = vector.shape_cast %99 : vector<8x8xf32> to vector<1x8x8xf32>
    %106 = vector.shape_cast %104 : vector<8x8xf32> to vector<1x8x8xf32>
    %107 = tpu.concatenate %105, %106 in 0 : vector<1x8x8xf32>, vector<1x8x8xf32> -> vector<2x8x8xf32>
    %c0_40 = arith.constant 0 : index
    %c0_41 = arith.constant 0 : index
    %c0_42 = arith.constant 0 : index
    %108 = vector.load %arg3[%c0_40, %c0_41, %c0_42] : memref<2x8x8xf32, #tpu.memory_space<vmem>>, vector<2x8x8xf32>
    tpu.vector_store %arg3[%c0_40, %c0_41, %c0_42], %107 {strides = array<i32>} : memref<2x8x8xf32, #tpu.memory_space<vmem>>, vector<2x8x8xf32>,
    return
  }
  func.func @transform_0(%arg0: i32) -> (i32, i32, i32) {
    %c0_i32 = arith.constant 0 : i32
    %c0_i32_0 = arith.constant 0 : i32
    %c0_i32_1 = arith.constant 0 : i32
    return %arg0, %c0_i32, %c0_i32_0 : i32, i32, i32
  }
  func.func @transform_1(%arg0: i32) -> (i32, i32) {
    %c0_i32 = arith.constant 0 : i32
    %c0_i32_0 = arith.constant 0 : i32
    %c0_i32_1 = arith.constant 0 : i32
    return %c0_i32, %c0_i32_0 : i32, i32
  }
  func.func @transform_2(%arg0: i32) -> (i32, i32, i32) {
    %c0_i32 = arith.constant 0 : i32
    %c0_i32_0 = arith.constant 0 : i32
    %c0_i32_1 = arith.constant 0 : i32
    return %arg0, %c0_i32, %c0_i32_0 : i32, i32, i32
  }
}

</mosaic_0001>

<bundles_post_ra>
// kernel: tpu_custom_call.1
= control target key start
LH: loop header
LB: loop body
LE: loop exit
PB: predicated region body
PF: predicated region fallthrough
CT: control target
= control target key end

     0   :  { %vm33_vm0 = vcmask 1040384   ;;  %s753_s15 = smov 4   ;;  %s1078_s0 = inlined_call_operand.vmem [shape: f32[2,16,4], index: 0, kind: input, shape index: {}]   ;;  %s1079_s1 = inlined_call_operand.vmem [shape: f32[336,32], index: 1, kind: input, shape index: {}]   ;;  %s1080_s2 = inlined_call_operand.hbm [shape: f32[2,8,8], index: 2, kind: output, shape index: {}]  }
   0x1   :  { %v779_v0 = vld [vmem:[%s1078_s0] sm:$0xff]  ;;  %v784_v1 = vld [vmem:[%s1078_s0 + $0x8] sm:$0xff]  ;;  %v789_v2 = vld [vmem:[%s1078_s0 + $0x10] sm:$0xff] }
   0x2   :  { %v34_v3 = vrot.slane %v779_v0, 7  ;;  %v35_v4 = vrot.slane %v784_v1, 7  ;;  %v37_v5 = vrot.slane %v789_v2, 7 }
   0x4   :  { %v42_v6 = vsel %vm33_vm0, 0.0, %v34_v3  ;;  %v36_v7 = vsel %vm33_vm0, %v34_v3, %v35_v4  ;;  %v43_v8 = vsel %vm33_vm0, 0.0, %v37_v5 }
   0x5   :  { %46 = vrot.lane.b32.xlu0 %v42_v6, %s753_s15  ;;  %48 = vrot.lane.b32.xlu1 %v36_v7, %s753_s15 }
   0x6   :  { %50 = vrot.lane.b32.xlu2 %v43_v8, %s753_s15 }
   0x7   :  { %7 = vsyncpa [#allocation3], 0  ;;  %v800_v9 = vld [vmem:[%s1078_s0 + $0x18] sm:$0xff]  ;;  %s754_s18 = smov 8   ;;  %v81_v12 = vld [vmem:[%s1079_s1 + $0x8] sm:$0xf] }
   0x8   :  { %v38_v10 = vrot.slane %v800_v9, 7  ;;  %vm97_vm1 = vcmask 1043456   ;;  %v80_v13 = vld [vmem:[%s1079_s1] sm:$0xff]  ;;  %v21_v15 = vrot.slane %v779_v0, 6  ;;  %vm20_vm2 = vcmask 1041408   ;;  %v215_v41 = vld [vmem:[%s1079_s1 + $0x70] sm:$0xff] }
   0x9   :  { %683 = vmatpush.msk.msra.mxu0 %vm97_vm1, %v81_v12  ;;  %vm70_vm3 = vcmask 31744   ;;  %vm75_vm4 = vcmask 64512   ;;  %v22_v18 = vrot.slane %v784_v1, 6  ;;  %vm84_vm5 = vcmask 97280   ;;  %v721_v38 = vld [vmem:[%s1079_s1 + $0x10] ss:$0 sm:$0xff]  ;;  %235 = vmatpush.msra.mxu1 %v215_v41 }
   0xa   :  { %v39_v11 = vsel %vm33_vm0, %v37_v5, %v38_v10  ;;  %v31_v17 = vsel %vm20_vm2, 0.0, %v21_v15  ;;  %v24_v26 = vrot.slane %v789_v2, 6  ;;  %v25_v29 = vrot.slane %v800_v9, 6  ;;  %s755_s26 = smov 64   ;;  %s756_s27 = smov 32   ;;  %v214_v10 = vld [vmem:[%s1079_s1 + $0x68] sm:$0xff] }
   0xb   :  { %116 = vmatpush.msra.mxu0 %v80_v13  ;;  %v23_v22 = vsel %vm20_vm2, %v21_v15, %v22_v18  ;;  %236 = vmatpush.msra.mxu1 %v214_v10  ;;  %v212_v12 = vld [vmem:[%s1079_s1 + $0x58] sm:$0xff]  ;;  %v211_v13 = vld [vmem:[%s1079_s1 + $0x50] sm:$0xff]  ;;  %v209_v15 = vld [vmem:[%s1079_s1 + $0x40] sm:$0xff]  ;;  %vm194_vm10 = vcmask 261120   ;;  %vm199_vm11 = vcmask 523264   ;;  %vm218_vm12 = vcmask 785408  }
   0xc   :  { %v32_v28 = vsel %vm20_vm2, 0.0, %v24_v26  ;;  %v26_v33 = vsel %vm20_vm2, %v24_v26, %v25_v29  ;;  %v207_v18 = vld [vmem:[%s1079_s1 + $0x30] sm:$0xff]  ;;  %v723_v41 = vld [vmem:[%s1079_s1 + $0x88] ss:$0 sm:$0xff]  ;;  %s757_s8 = smov 16   ;;  %s671_s24 = sshll.u32 %s1080_s2, 4  ;;  %s672_s24 = int_to_ptr.hbm [resolvable:$true] %s671_s24 }
   0xd   :  { %58 = vrot.lane.b32.xlu0 %v779_v0, %s754_s18  ;;  %60 = vrot.lane.b32.xlu1 %v784_v1, %s754_s18  ;;  %s760_s25 = smov 128  }
   0xe   :  { %62 = vrot.lane.b32.xlu2 %v789_v2, %s754_s18 }
  0x15   :  { %52 = vrot.lane.b32.xlu0 %v39_v11, %s753_s15  ;;  %64 = vrot.lane.b32.xlu1 %v800_v9, %s754_s18  ;;  %v213_v11 = vld [vmem:[%s1079_s1 + $0x60] sm:$0xff] }
  0x16   :  { %237 = vmatpush.msra.mxu1 %v213_v11 }
  0x18   :  { %238 = vmatpush.msra.mxu1 %v212_v12 }
  0x1a   :  { %239 = vmatpush.msra.mxu1 %v211_v13 }
  0x60   :  { %v51_v23 = vpop.permute.xlu2 %50 }
  0x61   :  { %v73_v30 = vsel %vm70_vm3, %v32_v28, %v51_v23 }
  0x68   :  { %v63_v31 = vpop.permute.xlu2 %62 }
  0x69   :  { %v78_v32 = vsel %vm75_vm4, %v73_v30, %v63_v31 }
  0x77   :  { %v47_v14 = vpop.permute.xlu0 %46  ;;  %v49_v16 = vpop.permute.xlu1 %48 }
  0x78   :  { %v71_v19 = vsel %vm70_vm3, %v31_v17, %v47_v14  ;;  %v72_v24 = vsel %vm70_vm3, %v23_v22, %v49_v16  ;;  %v210_v14 = vld [vmem:[%s1079_s1 + $0x48] sm:$0xff]  ;;  %v272_v16 = vld [vmem:[%s1079_s1 + $0x80] sm:$0xf]  ;;  %v208_v17 = vld [vmem:[%s1079_s1 + $0x38] sm:$0xff] }
  0x79   :  { %240 = vmatpush.msra.mxu1 %v210_v14  ;;  %692 = vmatpush.msk.msra.mxu2 %vm97_vm1, %v272_v16 }
  0x7a   :  { %693 = vmatmul.msk.f32.vlgmr.msra.gmra.mxu2 %vm70_vm3, %v779_v0  ;;  %v204_v0 = vld [vmem:[%s1079_s1 + $0x18] sm:$0xff] }
  0x7b   :  { %241 = vmatpush.msra.mxu1 %v209_v15 }
  0x7d   :  { %242 = vmatpush.msra.mxu1 %v208_v17 }
  0x7f   :  { %v59_v20 = vpop.permute.xlu0 %58  ;;  %v61_v25 = vpop.permute.xlu1 %60  ;;  %243 = vmatpush.msra.mxu1 %v207_v18 }
  0x80   :  { %v76_v21 = vsel %vm75_vm4, %v71_v19, %v59_v20  ;;  %v77_v27 = vsel %vm75_vm4, %v72_v24, %v61_v25  ;;  %v206_v19 = vld [vmem:[%s1079_s1 + $0x28] sm:$0xff]  ;;  %v205_v20 = vld [vmem:[%s1079_s1 + $0x20] sm:$0xff] }
  0x81   :  { %684 = vmatmul.msk.f32.vlgmr.msra.gmra.mxu0 %vm84_vm5, %v76_v21  ;;  %244 = vmatpush.msra.mxu1 %v206_v19 }
  0x82   :  { %694 = vmatmul.msk.f32.gmra.mxu2 %vm70_vm3, %v784_v1 }
  0x83   :  { %245 = vmatpush.msra.mxu1 %v205_v20 }
  0x85   :  { %246 = vmatpush.msra.mxu1 %v204_v0 }
  0x87   :  { %v53_v34 = vpop.permute.xlu0 %52  ;;  %v65_v36 = vpop.permute.xlu1 %64 }
  0x88   :  { %v74_v35 = vsel %vm70_vm3, %v26_v33, %v53_v34 }
  0x89   :  { %685 = vmatmul.msk.f32.gmra.mxu0 %vm84_vm5, %v77_v27  ;;  %v79_v37 = vsel %vm75_vm4, %v74_v35, %v65_v36  ;;  %v569_v36 = vld [vmem:[%s1079_s1 + $0x130] sm:$0xff] }
  0x8a   :  { %695 = vmatmul.msk.f32.gmra.mxu2 %vm70_vm3, %v789_v2  ;;  %592 = vmatpush.msrb.mxu0 %v569_v36 }
  0x91   :  { %686 = vmatmul.msk.f32.gmra.mxu0 %vm84_vm5, %v78_v32 }
  0x92   :  { %696 = vmatmul.msk.f32.gmra.mxu2 %vm70_vm3, %v800_v9 }
  0x99   :  { %687 = vmatmul.msk.f32.gmra.mxu0 %vm84_vm5, %v79_v37  ;;  %v568_v37 = vld [vmem:[%s1079_s1 + $0x128] sm:$0xff] }
  0x9a   :  { %593 = vmatpush.msrb.mxu0 %v568_v37 }
  0xfe   :  { %v118_v39 = vpop.f32.mrf.mxu0 }
  0xff   :  { %v119_v40 = vadd.f32 %v721_v38, %v118_v39  ;;  %v566_v39 = vld [vmem:[%s1079_s1 + $0x118] sm:$0xff] }
 0x101   :  { %v134_v42 = vmul.f32 0.01, %v119_v40  ;;  %vm130_vm6 = vcmp.gt.f32.partialorder %v119_v40, 0.0 }
 0x103   :  { %v845_v43 = vsel %vm130_vm6, %v119_v40, %v134_v42  ;;  %v722_v40 = vld [vmem:[%s1079_s1 + $0x78] ss:$0 sm:$0xff]  ;;  %v303_v42 = vpop.f32.mrf.mxu2 }
 0x104   :  { %182 = vrot.lane.b32.xlu0 %v845_v43, %s755_s26  ;;  %v158_v44 = vrot.slane %v845_v43, 7  ;;  %v146_v50 = vrot.slane %v845_v43, 6 }
 0x106   :  { %v121_v45 = vpop.f32.mrf.mxu0  ;;  %v166_v46 = vsel %vm33_vm0, 0.0, %v158_v44  ;;  %v156_v22 = vsel %vm20_vm2, 0.0, %v146_v50 }
 0x107   :  { %v122_v47 = vadd.f32 %v721_v38, %v121_v45  ;;  %170 = vrot.lane.b32.xlu2 %v166_v46, %s756_s27  ;;  %v304_v45 = vadd.f32 %v723_v41, %v303_v42 }
 0x109   :  { %v135_v48 = vmul.f32 0.01, %v122_v47  ;;  %vm131_vm7 = vcmp.gt.f32.partialorder %v122_v47, 0.0 }
 0x10b   :  { %v139_v49 = vsel %vm131_vm7, %v122_v47, %v135_v48 }
 0x10c   :  { %v147_v51 = vrot.slane %v139_v49, 6  ;;  %v159_v52 = vrot.slane %v139_v49, 7 }
 0x10e   :  { %v124_v53 = vpop.f32.mrf.mxu0  ;;  %v160_v54 = vsel %vm33_vm0, %v158_v44, %v159_v52  ;;  %v855_v55 = vsel %vm20_vm2, %v146_v50, %v147_v51 }
 0x10f   :  { %v125_v56 = vadd.f32 %v721_v38, %v124_v53  ;;  %184 = vrot.lane.b32.xlu2 %v139_v49, %s755_s26  ;;  %172 = vrot.lane.b32.xlu1 %v160_v54, %s756_s27  ;;  %v306_v49 = vpop.f32.mrf.mxu2 }
 0x110   :  { %v307_v54 = vadd.f32 %v723_v41, %v306_v49 }
 0x111   :  { %vm132_vm8 = vcmp.gt.f32.partialorder %v125_v56, 0.0  ;;  %v136_v57 = vmul.f32 0.01, %v125_v56 }
 0x113   :  { %v140_v58 = vsel %vm132_vm8, %v125_v56, %v136_v57  ;;  %vm512_vm8 = vcmask 195584  }
 0x114   :  { %v161_v59 = vrot.slane %v140_v58, 7  ;;  %v149_v4 = vrot.slane %v140_v58, 6 }
 0x116   :  { %v127_v60 = vpop.f32.mrf.mxu0  ;;  %v167_v61 = vsel %vm33_vm0, 0.0, %v161_v59  ;;  %v157_v28 = vsel %vm20_vm2, 0.0, %v149_v4 }
 0x117   :  { %v128_v62 = vadd.f32 %v721_v38, %v127_v60  ;;  %174 = vrot.lane.b32.xlu0 %v167_v61, %s756_s27  ;;  %186 = vrot.lane.b32.xlu1 %v140_v58, %s755_s26  ;;  %v567_v38 = vld [vmem:[%s1079_s1 + $0x120] sm:$0xff]  ;;  %v309_v57 = vpop.f32.mrf.mxu2 }
 0x118   :  { %594 = vmatpush.msrb.mxu0 %v567_v38 }
 0x119   :  { %v137_v63 = vmul.f32 0.01, %v128_v62  ;;  %vm133_vm9 = vcmp.gt.f32.partialorder %v128_v62, 0.0 }
 0x11a   :  { %595 = vmatpush.msrb.mxu0 %v566_v39 }
 0x11b   :  { %v141_v3 = vsel %vm133_vm9, %v128_v62, %v137_v63 }
 0x11c   :  { %v150_v5 = vrot.slane %v141_v3, 6  ;;  %v162_v6 = vrot.slane %v141_v3, 7 }
 0x11e   :  { %v163_v7 = vsel %vm33_vm0, %v161_v59, %v162_v6  ;;  %v151_v8 = vsel %vm20_vm2, %v149_v4, %v150_v5 }
 0x11f   :  { %188 = vrot.lane.b32.xlu0 %v141_v3, %s755_s26  ;;  %176 = vrot.lane.b32.xlu2 %v163_v7, %s756_s27  ;;  %v310_v3 = vadd.f32 %v723_v41, %v309_v57  ;;  %v312_v10 = vpop.f32.mrf.mxu2 }
 0x120   :  { %v313_v14 = vadd.f32 %v723_v41, %v312_v10 }
 0x161   :  { %v171_v21 = vpop.permute.xlu2 %170 }
 0x162   :  { %v195_v1 = vsel %vm194_vm10, %v156_v22, %v171_v21 }
 0x169   :  { %v185_v26 = vpop.permute.xlu2 %184 }
 0x176   :  { %v183_v23 = vpop.permute.xlu0 %182 }
 0x177   :  { %v200_v24 = vsel %vm199_vm11, %v195_v1, %v183_v23  ;;  %v390_v1 = vld [vmem:[%s1079_s1 + $0xe8] sm:$0xff]  ;;  %v389_v23 = vld [vmem:[%s1079_s1 + $0xe0] sm:$0xff] }
 0x178   :  { %688 = vmatmul.msk.f32.vlgmr.msra.gmra.mxu1 %vm218_vm12, %v200_v24  ;;  %409 = vmatpush.msra.mxu3 %v390_v1  ;;  %v388_v24 = vld [vmem:[%s1079_s1 + $0xd8] sm:$0xff] }
 0x179   :  { %v177_v32 = vpop.permute.xlu2 %176 }
 0x17a   :  { %v198_v33 = vsel %vm194_vm10, %v151_v8, %v177_v32  ;;  %410 = vmatpush.msra.mxu3 %v389_v23 }
 0x17c   :  { %411 = vmatpush.msra.mxu3 %v388_v24 }
 0x181   :  { %v173_v25 = vpop.permute.xlu1 %172 }
 0x182   :  { %v196_v2 = vsel %vm194_vm10, %v855_v55, %v173_v25  ;;  %v387_v25 = vld [vmem:[%s1079_s1 + $0xd0] sm:$0xff] }
 0x183   :  { %v201_v9 = vsel %vm199_vm11, %v196_v2, %v185_v26  ;;  %v386_v26 = vld [vmem:[%s1079_s1 + $0xc8] sm:$0xff]  ;;  %412 = vmatpush.msra.mxu3 %v387_v25  ;;  %v385_v2 = vld [vmem:[%s1079_s1 + $0xc0] sm:$0xff] }
 0x184   :  { %689 = vmatmul.msk.f32.gmra.mxu1 %vm218_vm12, %v201_v9  ;;  %v384_v9 = vld [vmem:[%s1079_s1 + $0xb8] sm:$0xff] }
 0x185   :  { %413 = vmatpush.msra.mxu3 %v386_v26 }
 0x187   :  { %414 = vmatpush.msra.mxu3 %v385_v2 }
 0x189   :  { %v175_v27 = vpop.permute.xlu0 %174  ;;  %v187_v29 = vpop.permute.xlu1 %186  ;;  %415 = vmatpush.msra.mxu3 %v384_v9 }
 0x18a   :  { %v197_v30 = vsel %vm194_vm10, %v157_v28, %v175_v27  ;;  %v383_v27 = vld [vmem:[%s1079_s1 + $0xb0] sm:$0xff]  ;;  %v382_v28 = vld [vmem:[%s1079_s1 + $0xa8] sm:$0xff] }
 0x18b   :  { %v202_v31 = vsel %vm199_vm11, %v197_v30, %v187_v29  ;;  %416 = vmatpush.msra.mxu3 %v383_v27  ;;  %v381_v29 = vld [vmem:[%s1079_s1 + $0xa0] sm:$0xff]  ;;  %v380_v30 = vld [vmem:[%s1079_s1 + $0x98] sm:$0xff] }
 0x18c   :  { %690 = vmatmul.msk.f32.gmra.mxu1 %vm218_vm12, %v202_v31  ;;  %v379_v31 = vld [vmem:[%s1079_s1 + $0x90] sm:$0xff] }
 0x18d   :  { %417 = vmatpush.msra.mxu3 %v382_v28 }
 0x18f   :  { %418 = vmatpush.msra.mxu3 %v381_v29 }
 0x191   :  { %v189_v34 = vpop.permute.xlu0 %188  ;;  %419 = vmatpush.msra.mxu3 %v380_v30 }
 0x192   :  { %v203_v35 = vsel %vm199_vm11, %v198_v33, %v189_v34 }
 0x193   :  { %420 = vmatpush.msra.mxu3 %v379_v31 }
 0x194   :  { %691 = vmatmul.msk.f32.gmra.mxu1 %vm218_vm12, %v203_v35 }
 0x1f5   :  { %v248_v43 = vpop.f32.mrf.mxu1 }
 0x1f6   :  { %v249_v44 = vadd.f32 %v722_v40, %v248_v43 }
 0x1f8   :  { %vm260_vm13 = vcmp.gt.f32.partialorder %v249_v44, 0.0  ;;  %v264_v46 = vmul.f32 0.01, %v249_v44 }
 0x1fa   :  { %v268_v47 = vsel %vm260_vm13, %v249_v44, %v264_v46 }
 0x1fb   :  { %v944_v48 = vadd.f32 %v304_v45, %v268_v47 }
 0x1fd   :  { %705 = vmatmul.msk.f32.vlgmr.msrb.gmra.mxu0 %vm194_vm10, %v944_v48  ;;  %359 = vrot.lane.b32.xlu2 %v944_v48, %s755_s26  ;;  %v335_v50 = vrot.slane %v944_v48, 6  ;;  %v323_v61 = vrot.slane %v944_v48, 4 }
 0x1ff   :  { %v343_v51 = vsel %vm20_vm2, 0.0, %v335_v50  ;;  %v333_v32 = vsel %vm97_vm1, 0.0, %v323_v61 }
 0x200   :  { %347 = vrot.lane.b32.xlu1 %v343_v51, %s756_s27 }
 0x201   :  { %v251_v52 = vpop.f32.mrf.mxu1 }
 0x202   :  { %v252_v53 = vadd.f32 %v722_v40, %v251_v52 }
 0x204   :  { %vm261_vm14 = vcmp.gt.f32.partialorder %v252_v53, 0.0  ;;  %v265_v55 = vmul.f32 0.01, %v252_v53 }
 0x206   :  { %v269_v56 = vsel %vm261_vm14, %v252_v53, %v265_v55 }
 0x207   :  { %v316_v58 = vadd.f32 %v307_v54, %v269_v56 }
 0x209   :  { %v254_v59 = vpop.f32.mrf.mxu1  ;;  %361 = vrot.lane.b32.xlu1 %v316_v58, %s755_s26  ;;  %706 = vmatmul.msk.f32.gmra.mxu0 %vm194_vm10, %v316_v58  ;;  %v336_v60 = vrot.slane %v316_v58, 6  ;;  %v324_v62 = vrot.slane %v316_v58, 4 }
 0x20a   :  { %v255_v63 = vadd.f32 %v722_v40, %v254_v59 }
 0x20b   :  { %v337_v4 = vsel %vm20_vm2, %v335_v50, %v336_v60  ;;  %v325_v5 = vsel %vm97_vm1, %v323_v61, %v324_v62  ;;  %v725_v50 = vld [vmem:[%s1079_s1 + $0xf0] ss:$0 sm:$0xff] }
 0x20c   :  { %vm262_vm15 = vcmp.gt.f32.partialorder %v255_v63, 0.0  ;;  %v266_v6 = vmul.f32 0.01, %v255_v63  ;;  %349 = vrot.lane.b32.xlu0 %v337_v4, %s756_s27 }
 0x20e   :  { %v270_v7 = vsel %vm262_vm15, %v255_v63, %v266_v6 }
 0x20f   :  { %v317_v8 = vadd.f32 %v310_v3, %v270_v7 }
 0x211   :  { %v257_v11 = vpop.f32.mrf.mxu1  ;;  %707 = vmatmul.msk.f32.gmra.mxu0 %vm194_vm10, %v317_v8  ;;  %v338_v12 = vrot.slane %v317_v8, 6  ;;  %v326_v20 = vrot.slane %v317_v8, 4 }
 0x212   :  { %v258_v13 = vadd.f32 %v722_v40, %v257_v11 }
 0x213   :  { %v344_v15 = vsel %vm20_vm2, 0.0, %v338_v12  ;;  %v334_v42 = vsel %vm97_vm1, 0.0, %v326_v20 }
 0x214   :  { %vm263_vm0 = vcmp.gt.f32.partialorder %v258_v13, 0.0  ;;  %v267_v16 = vmul.f32 0.01, %v258_v13  ;;  %351 = vrot.lane.b32.xlu2 %v344_v15, %s756_s27  ;;  %363 = vrot.lane.b32.xlu0 %v317_v8, %s755_s26 }
 0x216   :  { %v271_v17 = vsel %vm263_vm0, %v258_v13, %v267_v16 }
 0x217   :  { %v318_v18 = vadd.f32 %v313_v14, %v271_v17 }
 0x219   :  { %708 = vmatmul.msk.f32.gmra.mxu0 %vm194_vm10, %v318_v18  ;;  %v339_v19 = vrot.slane %v318_v18, 6  ;;  %v327_v0 = vrot.slane %v318_v18, 4 }
 0x21b   :  { %v340_v21 = vsel %vm20_vm2, %v338_v12, %v339_v19  ;;  %v328_v22 = vsel %vm97_vm1, %v326_v20, %v327_v0  ;;  %v509_v0 = vld [vmem:[%s1079_s1 + $0x108] sm:$0xff] }
 0x21c   :  { %365 = vrot.lane.b32.xlu2 %v318_v18, %s755_s26  ;;  %353 = vrot.lane.b32.xlu1 %v340_v21, %s756_s27  ;;  %v508_v21 = vld [vmem:[%s1079_s1 + $0x100] sm:$0xff] }
 0x21d   :  { %538 = vmatpush.msrb.mxu2 %v509_v0 }
 0x21f   :  { %539 = vmatpush.msrb.mxu2 %v508_v21 }
 0x257   :  { %v360_v34 = vpop.permute.xlu2 %359 }
 0x26e   :  { %v352_v41 = vpop.permute.xlu2 %351 }
 0x26f   :  { %v373_v43 = vsel %vm194_vm10, %v334_v42, %v352_v41  ;;  %v614_v42 = vld [vmem:[%s1079_s1 + $0x148] sm:$0xff] }
 0x272   :  { %v348_v33 = vpop.permute.xlu1 %347 }
 0x273   :  { %v371_v35 = vsel %vm194_vm10, %v333_v32, %v348_v33 }
 0x274   :  { %v375_v36 = vsel %vm199_vm11, %v371_v35, %v360_v34 }
 0x275   :  { %697 = vmatmul.msk.f32.vlgmr.msra.gmra.mxu3 %vm218_vm12, %v375_v36 }
 0x276   :  { %v366_v47 = vpop.permute.xlu2 %365 }
 0x27b   :  { %v362_v38 = vpop.permute.xlu1 %361 }
 0x27e   :  { %v350_v37 = vpop.permute.xlu0 %349 }
 0x27f   :  { %v372_v39 = vsel %vm194_vm10, %v325_v5, %v350_v37 }
 0x280   :  { %v376_v40 = vsel %vm199_vm11, %v372_v39, %v362_v38  ;;  %v597_v39 = vpop.f32.mrf.mxu0 }
 0x281   :  { %698 = vmatmul.msk.f32.gmra.mxu3 %vm218_vm12, %v376_v40  ;;  %v726_v40 = vld [vmem:[%s1079_s1 + $0x110] ss:$0 sm:$0xff] }
 0x286   :  { %v364_v44 = vpop.permute.xlu0 %363 }
 0x287   :  { %v377_v45 = vsel %vm199_vm11, %v373_v43, %v364_v44  ;;  %v758_v44 = vmov 0  }
 0x288   :  { %719 = vset.pattern.permute.xlu2 %v758_v44  ;;  %720 = vset.pattern.permute.xlu0 %v758_v44 }
 0x289   :  { %699 = vmatmul.msk.f32.gmra.mxu3 %vm218_vm12, %v377_v45  ;;  %v600_v45 = vpop.f32.mrf.mxu0 }
 0x28e   :  { %v354_v46 = vpop.permute.xlu1 %353 }
 0x28f   :  { %v374_v48 = vsel %vm194_vm10, %v328_v22, %v354_v46  ;;  %v507_v22 = vld [vmem:[%s1079_s1 + $0xf8] sm:$0xff] }
 0x290   :  { %v378_v49 = vsel %vm199_vm11, %v374_v48, %v366_v47  ;;  %540 = vmatpush.msrb.mxu2 %v507_v22  ;;  %v724_v48 = vld [vmem:[%s1079_s1 + $0x138] ss:$0 sm:$0xff] }
 0x291   :  { %700 = vmatmul.msk.f32.gmra.mxu3 %vm218_vm12, %v378_v49 }
 0x2f8   :  { %v422_v51 = vpop.f32.mrf.mxu3 }
 0x2f9   :  { %v423_v52 = vadd.f32 %v725_v50, %v422_v51 }
 0x2fb   :  { %v438_v53 = vmul.f32 0.01, %v423_v52  ;;  %vm434_vm3 = vcmp.gt.f32.partialorder %v423_v52, 0.0 }
 0x2fd   :  { %v442_v54 = vsel %vm434_vm3, %v423_v52, %v438_v53  ;;  %v598_v53 = vadd.f32 %v724_v48, %v597_v39 }
 0x2fe   :  { %486 = vrot.lane.b32.xlu1 %v442_v54, %s757_s8  ;;  %v462_v55 = vrot.slane %v442_v54, 6  ;;  %v450_v61 = vrot.slane %v442_v54, 4 }
 0x300   :  { %v470_v56 = vsel %vm20_vm2, 0.0, %v462_v55  ;;  %v460_v1 = vsel %vm97_vm1, 0.0, %v450_v61 }
 0x301   :  { %474 = vrot.lane.b32.xlu0 %v470_v56, %s754_s18  ;;  %v613_v56 = vld [vmem:[%s1079_s1 + $0x140] sm:$0xff]  ;;  %s759_s1 = smov [#allocation2]  }
 0x302   :  { %s669_s21 = sshll.u32 %s759_s1, 4  ;;  %s670_s21 = int_to_ptr.vmem [resolvable:$true] %s669_s21 }
 0x304   :  { %v425_v57 = vpop.f32.mrf.mxu3 }
 0x305   :  { %v426_v58 = vadd.f32 %v725_v50, %v425_v57  ;;  %v603_v57 = vpop.f32.mrf.mxu0 }
 0x307   :  { %v439_v59 = vmul.f32 0.01, %v426_v58  ;;  %vm435_vm5 = vcmp.gt.f32.partialorder %v426_v58, 0.0 }
 0x309   :  { %v443_v60 = vsel %vm435_vm5, %v426_v58, %v439_v59 }
 0x30a   :  { %488 = vrot.lane.b32.xlu0 %v443_v60, %s757_s8  ;;  %v451_v62 = vrot.slane %v443_v60, 4  ;;  %v463_v63 = vrot.slane %v443_v60, 6 }
 0x30c   :  { %v428_v3 = vpop.f32.mrf.mxu3  ;;  %v464_v4 = vsel %vm20_vm2, %v462_v55, %v463_v63  ;;  %v452_v5 = vsel %vm97_vm1, %v450_v61, %v451_v62 }
 0x30d   :  { %v429_v6 = vadd.f32 %v725_v50, %v428_v3  ;;  %476 = vrot.lane.b32.xlu2 %v464_v4, %s754_s18  ;;  %v606_v61 = vpop.f32.mrf.mxu0 }
 0x30e   :  { %v607_v4 = vadd.f32 %v724_v48, %v606_v61 }
 0x30f   :  { %vm436_vm6 = vcmp.gt.f32.partialorder %v429_v6, 0.0  ;;  %v440_v7 = vmul.f32 0.01, %v429_v6 }
 0x311   :  { %v444_v8 = vsel %vm436_vm6, %v429_v6, %v440_v7  ;;  %v604_v7 = vadd.f32 %v724_v48, %v603_v57 }
 0x312   :  { %v465_v10 = vrot.slane %v444_v8, 6  ;;  %v453_v18 = vrot.slane %v444_v8, 4 }
 0x314   :  { %v431_v11 = vpop.f32.mrf.mxu3  ;;  %v471_v12 = vsel %vm20_vm2, 0.0, %v465_v10  ;;  %v461_v30 = vsel %vm97_vm1, 0.0, %v453_v18 }
 0x315   :  { %v432_v13 = vadd.f32 %v725_v50, %v431_v11  ;;  %478 = vrot.lane.b32.xlu1 %v471_v12, %s754_s18  ;;  %490 = vrot.lane.b32.xlu2 %v444_v8, %s757_s8  ;;  %v601_v50 = vadd.f32 %v724_v48, %v600_v45 }
 0x317   :  { %v441_v14 = vmul.f32 0.01, %v432_v13  ;;  %vm437_vm7 = vcmp.gt.f32.partialorder %v432_v13, 0.0 }
 0x319   :  { %v445_v15 = vsel %vm437_vm7, %v432_v13, %v441_v14 }
 0x31a   :  { %v454_v16 = vrot.slane %v445_v15, 4  ;;  %v466_v17 = vrot.slane %v445_v15, 6 }
 0x31c   :  { %v467_v19 = vsel %vm20_vm2, %v465_v10, %v466_v17  ;;  %v455_v20 = vsel %vm97_vm1, %v453_v18, %v454_v16  ;;  %vm502_vm2 = vcmask 130048  }
 0x31d   :  { %492 = vrot.lane.b32.xlu1 %v445_v15, %s757_s8  ;;  %480 = vrot.lane.b32.xlu0 %v467_v19, %s754_s18 }
 0x31e   :  { %617 = vperm.xlu2 %719, %v614_v42  }
 0x367   :  { %v477_v2 = vpop.permute.xlu2 %476 }
 0x368   :  { %v499_v9 = vsel %vm75_vm4, %v452_v5, %v477_v2 }
 0x36f   :  { %v491_v31 = vpop.permute.xlu2 %490 }
 0x370   :  { %v487_v24 = vpop.permute.xlu1 %486 }
 0x373   :  { %v475_v23 = vpop.permute.xlu0 %474 }
 0x374   :  { %v498_v25 = vsel %vm75_vm4, %v460_v1, %v475_v23 }
 0x375   :  { %v503_v26 = vsel %vm502_vm2, %v498_v25, %v487_v24 }
 0x376   :  { %701 = vmatmul.msk.f32.vlgmr.msrb.gmra.mxu2 %vm512_vm8, %v503_v26 }
 0x378   :  { %v618_v11 = vpop.permute.xlu2 %617 }
 0x37c   :  { %v489_v27 = vpop.permute.xlu0 %488 }
 0x37d   :  { %v504_v28 = vsel %vm502_vm2, %v499_v9, %v489_v27 }
 0x37e   :  { %702 = vmatmul.msk.f32.gmra.mxu2 %vm512_vm8, %v504_v28 }
 0x387   :  { %v479_v29 = vpop.permute.xlu1 %478 }
 0x388   :  { %v500_v32 = vsel %vm75_vm4, %v461_v30, %v479_v29 }
 0x389   :  { %v505_v33 = vsel %vm502_vm2, %v500_v32, %v491_v31 }
 0x38a   :  { %703 = vmatmul.msk.f32.gmra.mxu2 %vm512_vm8, %v505_v33 }
 0x38f   :  { %v493_v34 = vpop.permute.xlu1 %492  ;;  %v481_v35 = vpop.permute.xlu0 %480 }
 0x390   :  { %v501_v36 = vsel %vm75_vm4, %v455_v20, %v481_v35 }
 0x391   :  { %v506_v37 = vsel %vm502_vm2, %v501_v36, %v493_v34 }
 0x392   :  { %704 = vmatmul.msk.f32.gmra.mxu2 %vm512_vm8, %v506_v37 }
 0x3f9   :  { %v542_v38 = vpop.f32.mrf.mxu2 }
 0x3fa   :  { %v543_v41 = vadd.f32 %v726_v40, %v542_v38 }
 0x3fc   :  { %v558_v46 = vmul.f32 0.01, %v543_v41  ;;  %vm554_vm1 = vcmp.gt.f32.partialorder %v543_v41, 0.0 }
 0x3fe   :  { %v562_v52 = vsel %vm554_vm1, %v543_v41, %v558_v46 }
 0x3ff   :  { %v609_v55 = vadd.f32 %v598_v53, %v562_v52 }
 0x401   :  { %v545_v43 = vpop.f32.mrf.mxu2 }
 0x402   :  { %v546_v47 = vadd.f32 %v726_v40, %v545_v43 }
 0x404   :  { %v559_v49 = vmul.f32 0.01, %v546_v47  ;;  %vm555_vm9 = vcmp.gt.f32.partialorder %v546_v47, 0.0 }
 0x406   :  { %v563_v51 = vsel %vm555_vm9, %v546_v47, %v559_v49 }
 0x407   :  { %v610_v54 = vadd.f32 %v601_v50, %v563_v51 }
 0x409   :  { %637 = vmatpush.msrb.mxu1 %v610_v54 }
 0x40b   :  { %638 = vmatpush.msrb.mxu1 %v609_v55 }
 0x40c   :  { %709 = vmatmul.msk.f32.vlgmr.msrb.gmra.mxu1 %vm502_vm2, %v613_v56 }
 0x40d   :  { %v548_v58 = vpop.f32.mrf.mxu2 }
 0x40e   :  { %v549_v59 = vadd.f32 %v726_v40, %v548_v58 }
 0x410   :  { %v560_v62 = vmul.f32 0.01, %v549_v59  ;;  %vm556_vm10 = vcmp.gt.f32.partialorder %v549_v59, 0.0 }
 0x412   :  { %v564_v6 = vsel %vm556_vm10, %v549_v59, %v560_v62 }
 0x413   :  { %v611_v10 = vadd.f32 %v604_v7, %v564_v6 }
 0x415   :  { %v551_v60 = vpop.f32.mrf.mxu2 }
 0x416   :  { %v552_v63 = vadd.f32 %v726_v40, %v551_v60 }
 0x418   :  { %v561_v3 = vmul.f32 0.01, %v552_v63  ;;  %vm557_vm11 = vcmp.gt.f32.partialorder %v552_v63, 0.0 }
 0x41a   :  { %v565_v5 = vsel %vm557_vm11, %v552_v63, %v561_v3 }
 0x41b   :  { %v612_v8 = vadd.f32 %v607_v4, %v565_v5 }
 0x41d   :  { %657 = vmatpush.msrb.mxu3 %v612_v8 }
 0x41f   :  { %658 = vmatpush.msrb.mxu3 %v611_v10 }
 0x420   :  { %710 = vmatmul.msk.f32.vlgmr.msrb.gmra.mxu3 %vm502_vm2, %v613_v56 }
 0x489   :  { %v640_v12 = vpop.f32.mrf.mxu1 }
 0x48a   :  { %v641_v13 = vadd.f32 %v640_v12, %v618_v11 }
 0x48c   :  { %663 = vst.msk [vmem:[#allocation2] sm:$0xff] %vm75_vm4, %v641_v13 }
 0x4a3   :  { %v660_v14 = vpop.f32.mrf.mxu3 }
 0x4a4   :  { %v661_v15 = vadd.f32 %v660_v14, %v618_v11 }
 0x4a6   :  { %664 = vst.msk [vmem:[#allocation2 + $0x8] sm:$0xff] %vm75_vm4, %v661_v15 }
 0x4a7   :  { %677 = dma.vmem_to_hbm [thread:$0]  %s670_s21, 256, %s672_s24, [#allocation3], %s760_s25, %s760_s25, %s754_s18  }
 0x4a8   :  { %751 = dma.done.wait [#allocation3], 256  }
 0x4a9   :  { %752 = vsyncadd [#allocation3], 4294967040 }
 0x4aa   :  { %682 = vsyncpa [#allocation3], 1 }

</bundles_post_ra>
